<compile_context>
chip_gen: v5e
topology: v5e:2x2
jax: 0.10.0
libtpu: 0.0.40
codegen_flags: <defaults>
</compile_context>

<pallas_src>
import functools

import jax
import jax.numpy as jnp
from jax import lax
from jax.experimental import pallas as pl
from jax.experimental.pallas import tpu as pltpu


def _gradient_loss_kernel(p_ref, g_ref, o_ref, *, total_planes, width):
    # p_ref / g_ref: (bt, H*W) block of flattened (N*C, H*W) planes, native dtype.
    p = p_ref[...].astype(jnp.float32)
    g = g_ref[...].astype(jnp.float32)
    bt, hw = p.shape
    w = width

    # ---- dx: forward difference along W, zero padding at the right edge ---------------
    # Circular roll by -1 on the flattened plane axis gives x[idx+1]; positions on the
    # last column (idx % W == W-1) must instead see the zero pad -> mask the wrap-in.
    idx = lax.broadcasted_iota(jnp.int32, (1, hw), 1)
    col = (idx & (w - 1)) if (w & (w - 1)) == 0 else (idx % w)
    last_col = col == (w - 1)
    sp = jnp.where(last_col, 0.0, pltpu.roll(p, shift=hw - 1, axis=1))
    sg = jnp.where(last_col, 0.0, pltpu.roll(g, shift=hw - 1, axis=1))
    ddx = jnp.abs(jnp.abs(sp - p) - jnp.abs(sg - g))

    # ---- dy: forward difference along H, zero padding at the bottom edge --------------
    # Unmasked circular roll by -W gives x[idx+W] (the wrap brings row 0 into the last
    # row); the bottom-edge padding is applied as a thin per-plane correction below
    # instead of a full-block select (saves 2 VALU ops / element).
    tp = pltpu.roll(p, shift=hw - w, axis=1)
    tg = pltpu.roll(g, shift=hw - w, axis=1)
    ddy = jnp.abs(jnp.abs(tp - p) - jnp.abs(tg - g))

    per_plane = jnp.sum(ddx + ddy, axis=1, keepdims=True)          # (bt, 1)

    # Thin bottom-row correction, (bt, W) work only:
    #   correct last-row dy term        = ||p_last| - |g_last||            (shifted val 0)
    #   what the unmasked roll counted  = ||p_first - p_last| - |g_first - g_last||
    p_first, p_last = p[:, :w], p[:, hw - w:]
    g_first, g_last = g[:, :w], g[:, hw - w:]
    right = jnp.abs(jnp.abs(p_last) - jnp.abs(g_last))
    wrong = jnp.abs(jnp.abs(p_first - p_last) - jnp.abs(g_first - g_last))
    per_plane = per_plane + jnp.sum(right - wrong, axis=1, keepdims=True)

    # Ragged tail: the last block may extend past B = N*C planes; Pallas gives undefined
    # data there, so zero those planes' contributions (cheap (bt, 1) select; rolls,
    # slices and axis=1 sums never mix planes, so garbage cannot leak into valid planes).
    plane_id = pl.program_id(0) * bt + lax.broadcasted_iota(jnp.int32, (bt, 1), 0)
    per_plane = jnp.where(plane_id < total_planes, per_plane, 0.0)

    # Lane-dense, unmasked (8,128) store; the wrapper reads element [0, 0] of each slot.
    o_ref[0] = jnp.full((8, 128), jnp.sum(per_plane), dtype=jnp.float32)


def gradient_loss(preds, gts, *, block_planes=None):
    """preds, gts: (N, C, H, W) float arrays (any float dtype) -> scalar f32 loss."""
    assert preds.shape == gts.shape
    N, C, H, W = preds.shape
    B, HW = N * C, H * W

    # Free, copy-less views: collapse (N, C) and flatten each plane so the last (lane)
    # dim is H*W.  No dtype cast here: the kernel upcasts in VMEM, so bf16 inputs move
    # half the HBM bytes.
    p = preds.reshape(B, HW)
    g = gts.reshape(B, HW)

    if block_planes is not None:
        bt = max(1, min(int(block_planes), B))
    else:
        # ~2 MiB of f32 working data per array per step keeps the double-buffered native
        # inputs + f32 temporaries comfortably inside the 32 MiB scoped-VMEM default on
        # every chip (v5e/v6e can raise the target + vmem limit for a few extra %).
        bt = max(1, (2 * 1024 * 1024) // (HW * 4))
        if B >= 16:
            bt = min(bt, -(-B // 2))      # >= 2 chunks so v7x megacore shards the grid
        bt = min(bt, B)
        if 8 <= bt < B:
            bt = (bt // 8) * 8            # keep interior blocks sublane-aligned (8, .)
    num_chunks = -(-B // bt)

    kernel = functools.partial(_gradient_loss_kernel, total_planes=B, width=W)
    partials = pl.pallas_call(
        kernel,
        out_shape=jax.ShapeDtypeStruct((num_chunks, 8, 128), jnp.float32),
        grid_spec=pltpu.PrefetchScalarGridSpec(
            num_scalar_prefetch=0,
            grid=(num_chunks,),
            in_specs=[
                pl.BlockSpec((bt, HW), lambda b: (b, 0)),
                pl.BlockSpec((bt, HW), lambda b: (b, 0)),
            ],
            out_specs=pl.BlockSpec((1, 8, 128), lambda b: (b, 0, 0)),
        ),
        compiler_params=pltpu.CompilerParams(
            # Independent per-chunk partial sums -> the grid axis can be megacore-sharded
            # (2x on v7x; no effect on single-TC v5e/v6e).
            dimension_semantics=("parallel",),
            vmem_limit_bytes=32 * 1024 * 1024,
        ),
    )(p, g)

    return jnp.sum(partials[:, 0, 0]) / jnp.float32(B * HW)


def _reference_gradient_loss(preds, gts):
    """Plain-JAX reference mirroring the PyTorch module exactly."""
    def dx(x):
        xp = jnp.pad(x, ((0, 0), (0, 0), (0, 0), (0, 1)))
        return jnp.abs(xp[..., :, 1:] - xp[..., :, :-1])

    def dy(x):
        xp = jnp.pad(x, ((0, 0), (0, 0), (0, 1), (0, 0)))
        return jnp.abs(xp[..., 1:, :] - xp[..., :-1, :])

    diff_dx = jnp.abs(dx(preds) - dx(gts))
    diff_dy = jnp.abs(dy(preds) - dy(gts))
    return jnp.mean(diff_dx + diff_dy)


if __name__ == "__main__":
    key = jax.random.PRNGKey(0)
    k1, k2, k3, k4 = jax.random.split(key, 4)

    # Primary example: batch=2, channels=4, spatial 16x16 (B=8 planes -> single block).
    N, C, H, W = 2, 4, 16, 16
    preds = jax.random.normal(k1, (N, C, H, W), dtype=jnp.float32)
    gts = jax.random.normal(k2, (N, C, H, W), dtype=jnp.float32)
    ref = jax.block_until_ready(_reference_gradient_loss(preds, gts))
    loss = jax.block_until_ready(gradient_loss(preds, gts))
    assert jnp.allclose(loss, ref, rtol=1e-5, atol=1e-6), (loss, ref)

    # bf16 inputs: no wrapper-side cast/copy; kernel upcasts in VMEM (same f32 math as
    # the reference applied to the bf16-rounded values).
    pb, gb = preds.astype(jnp.bfloat16), gts.astype(jnp.bfloat16)
    ref_b = jax.block_until_ready(
        _reference_gradient_loss(pb.astype(jnp.float32), gb.astype(jnp.float32)))
    loss_b = jax.block_until_ready(gradient_loss(pb, gb))
    assert jnp.allclose(loss_b, ref_b, rtol=1e-5, atol=1e-6), (loss_b, ref_b)

    # Multi-chunk + ragged-tail path: B=12 planes with bt=8 -> grid=2, last block has
    # 4 valid planes masked in-kernel (no wrapper jnp.pad).
    preds2 = jax.random.normal(k3, (3, 4, 16, 16), dtype=jnp.float32)
    gts2 = jax.random.normal(k4, (3, 4, 16, 16), dtype=jnp.float32)
    ref2 = jax.block_until_ready(_reference_gradient_loss(preds2, gts2))
    loss2 = jax.block_until_ready(gradient_loss(preds2, gts2, block_planes=8))
    assert jnp.allclose(loss2, ref2, rtol=1e-5, atol=1e-6), (loss2, ref2)

    print("KERNEL_OK")
</pallas_src>

<mosaic_0001>
module attributes {stable_mosaic.version = 11 : i64} {
  func.func @_gradient_loss_kernel(%arg0: i32, %arg1: memref<8x256xf32, #tpu.memory_space<vmem>>, %arg2: memref<8x256xf32, #tpu.memory_space<vmem>>, %arg3: memref<1x8x128xf32, #tpu.memory_space<vmem>>) attributes {dimension_semantics = [#tpu.dimension_semantics<parallel>], iteration_bounds = array<i64: 1>, scalar_prefetch = 0 : i64, scratch_operands = 0 : i64, tpu.core_type = #tpu.core_type<tc>, window_params = [{transform_indices = @transform_0, window_bounds = array<i64: 8, 256>}, {transform_indices = @transform_1, window_bounds = array<i64: 8, 256>}, {transform_indices = @transform_2, window_bounds = array<i64: 1, 8, 128>}]} {
    %c0 = arith.constant 0 : index
    %c0_0 = arith.constant 0 : index
    %0 = vector.load %arg1[%c0, %c0_0] : memref<8x256xf32, #tpu.memory_space<vmem>>, vector<8x256xf32>
    %c0_1 = arith.constant 0 : index
    %c0_2 = arith.constant 0 : index
    %1 = vector.load %arg2[%c0_1, %c0_2] : memref<8x256xf32, #tpu.memory_space<vmem>>, vector<8x256xf32>
    %2 = tpu.iota {dimensions = array<i32: 1>} : vector<1x256xi32>
    %c15_i32 = arith.constant 15 : i32
    %3 = vector.broadcast %c15_i32 : i32 to vector<1x256xi32>
    %4 = arith.andi %2, %3 : vector<1x256xi32>
    %c15_i32_3 = arith.constant 15 : i32
    %5 = vector.broadcast %c15_i32_3 : i32 to vector<1x256xi32>
    %6 = arith.cmpi eq, %4, %5 : vector<1x256xi32>
    %c255_i32 = arith.constant 255 : i32
    %7 = tpu.dynamic_rotate %0 by %c255_i32 dim 1 : vector<8x256xf32>, i32 -> vector<8x256xf32>
    %cst = arith.constant 0.000000e+00 : f32
    %8 = vector.shape_cast %6 : vector<1x256xi1> to vector<1x256xi1>
    %9 = vector.broadcast %8 : vector<1x256xi1> to vector<8x256xi1>
    %10 = vector.broadcast %cst : f32 to vector<8x256xf32>
    %11 = arith.select %9, %10, %7 : vector<8x256xi1>, vector<8x256xf32>
    %c255_i32_4 = arith.constant 255 : i32
    %12 = tpu.dynamic_rotate %1 by %c255_i32_4 dim 1 : vector<8x256xf32>, i32 -> vector<8x256xf32>
    %cst_5 = arith.constant 0.000000e+00 : f32
    %13 = vector.shape_cast %6 : vector<1x256xi1> to vector<1x256xi1>
    %14 = vector.broadcast %13 : vector<1x256xi1> to vector<8x256xi1>
    %15 = vector.broadcast %cst_5 : f32 to vector<8x256xf32>
    %16 = arith.select %14, %15, %12 : vector<8x256xi1>, vector<8x256xf32>
    %17 = arith.subf %11, %0 : vector<8x256xf32>
    %18 = math.absf %17 : vector<8x256xf32>
    %19 = arith.subf %16, %1 : vector<8x256xf32>
    %20 = math.absf %19 : vector<8x256xf32>
    %21 = arith.subf %18, %20 : vector<8x256xf32>
    %22 = math.absf %21 : vector<8x256xf32>
    %c240_i32 = arith.constant 240 : i32
    %23 = tpu.dynamic_rotate %0 by %c240_i32 dim 1 : vector<8x256xf32>, i32 -> vector<8x256xf32>
    %c240_i32_6 = arith.constant 240 : i32
    %24 = tpu.dynamic_rotate %1 by %c240_i32_6 dim 1 : vector<8x256xf32>, i32 -> vector<8x256xf32>
    %25 = arith.subf %23, %0 : vector<8x256xf32>
    %26 = math.absf %25 : vector<8x256xf32>
    %27 = arith.subf %24, %1 : vector<8x256xf32>
    %28 = math.absf %27 : vector<8x256xf32>
    %29 = arith.subf %26, %28 : vector<8x256xf32>
    %30 = math.absf %29 : vector<8x256xf32>
    %31 = arith.addf %22, %30 : vector<8x256xf32>
    %cst_7 = arith.constant dense<0.000000e+00> : vector<8xf32>
    %32 = vector.multi_reduction <add>, %31, %cst_7 [1] : vector<8x256xf32> to vector<8xf32>
    %33 = vector.shape_cast %32 : vector<8xf32> to vector<8x1xf32>
    %34 = vector.extract_strided_slice %0 {offsets = [0, 0], sizes = [8, 16], strides = [1, 1]} : vector<8x256xf32> to vector<8x16xf32>
    %35 = vector.extract_strided_slice %0 {offsets = [0, 240], sizes = [8, 16], strides = [1, 1]} : vector<8x256xf32> to vector<8x16xf32>
    %36 = vector.extract_strided_slice %1 {offsets = [0, 0], sizes = [8, 16], strides = [1, 1]} : vector<8x256xf32> to vector<8x16xf32>
    %37 = vector.extract_strided_slice %1 {offsets = [0, 240], sizes = [8, 16], strides = [1, 1]} : vector<8x256xf32> to vector<8x16xf32>
    %38 = math.absf %35 : vector<8x16xf32>
    %39 = math.absf %37 : vector<8x16xf32>
    %40 = arith.subf %38, %39 : vector<8x16xf32>
    %41 = math.absf %40 : vector<8x16xf32>
    %42 = arith.subf %34, %35 : vector<8x16xf32>
    %43 = math.absf %42 : vector<8x16xf32>
    %44 = arith.subf %36, %37 : vector<8x16xf32>
    %45 = math.absf %44 : vector<8x16xf32>
    %46 = arith.subf %43, %45 : vector<8x16xf32>
    %47 = math.absf %46 : vector<8x16xf32>
    %48 = arith.subf %41, %47 : vector<8x16xf32>
    %cst_8 = arith.constant dense<0.000000e+00> : vector<8xf32>
    %49 = vector.multi_reduction <add>, %48, %cst_8 [1] : vector<8x16xf32> to vector<8xf32>
    %50 = vector.shape_cast %49 : vector<8xf32> to vector<8x1xf32>
    %51 = arith.addf %33, %50 : vector<8x1xf32>
    %c8_i32 = arith.constant 8 : i32
    %52 = arith.muli %arg0, %c8_i32 : i32
    %53 = tpu.iota {dimensions = array<i32: 0>} : vector<8x1xi32>
    %54 = vector.broadcast %52 : i32 to vector<8x1xi32>
    %55 = arith.addi %54, %53 : vector<8x1xi32>
    %c8_i32_9 = arith.constant 8 : i32
    %56 = vector.broadcast %c8_i32_9 : i32 to vector<8x1xi32>
    %57 = arith.cmpi slt, %55, %56 : vector<8x1xi32>
    %cst_10 = arith.constant 0.000000e+00 : f32
    %58 = vector.broadcast %cst_10 : f32 to vector<8x1xf32>
    %59 = arith.select %57, %51, %58 : vector<8x1xi1>, vector<8x1xf32>
    %60 = vector.shape_cast %59 : vector<8x1xf32> to vector<1x8x1xf32>
    %cst_11 = arith.constant dense<0.000000e+00> : vector<1xf32>
    %61 = vector.multi_reduction <add>, %60, %cst_11 [1, 2] : vector<1x8x1xf32> to vector<1xf32>
    %62 = vector.shape_cast %61 : vector<1xf32> to vector<1x1x1xf32>
    %63 = vector.extract %62[0, 0, 0] : f32 from vector<1x1x1xf32>
    %64 = vector.broadcast %63 : f32 to vector<8x128xf32>
    %c0_12 = arith.constant 0 : index
    %c0_13 = arith.constant 0 : index
    %c0_14 = arith.constant 0 : index
    %65 = vector.load %arg3[%c0_12, %c0_13, %c0_14] : memref<1x8x128xf32, #tpu.memory_space<vmem>>, vector<1x8x128xf32>
    %66 = vector.shape_cast %65 : vector<1x8x128xf32> to vector<8x128xf32>
    %67 = vector.shape_cast %64 : vector<8x128xf32> to vector<1x8x128xf32>
    tpu.vector_store %arg3[%c0_12, %c0_13, %c0_14], %67 {strides = array<i32>} : memref<1x8x128xf32, #tpu.memory_space<vmem>>, vector<1x8x128xf32>,
    return
  }
  func.func @transform_0(%arg0: i32) -> (i32, i32) {
    %c0_i32 = arith.constant 0 : i32
    %c0_i32_0 = arith.constant 0 : i32
    return %arg0, %c0_i32 : i32, i32
  }
  func.func @transform_1(%arg0: i32) -> (i32, i32) {
    %c0_i32 = arith.constant 0 : i32
    %c0_i32_0 = arith.constant 0 : i32
    return %arg0, %c0_i32 : i32, i32
  }
  func.func @transform_2(%arg0: i32) -> (i32, i32, i32) {
    %c0_i32 = arith.constant 0 : i32
    %c0_i32_0 = arith.constant 0 : i32
    %c0_i32_1 = arith.constant 0 : i32
    return %arg0, %c0_i32, %c0_i32_0 : i32, i32, i32
  }
}

</mosaic_0001>

<bundles_post_ra>
// kernel: tpu_custom_call.1
= control target key start
LH: loop header
LB: loop body
LE: loop exit
PB: predicated region body
PF: predicated region fallthrough
CT: control target
= control target key end

     0   :  { %7 = vsyncpa [#allocation3], 0  ;;  %s330_s0 = inlined_call_operand.hbm [shape: f32[8,256], index: 0, kind: input, shape index: {}]   ;;  %s331_s1 = inlined_call_operand.hbm [shape: f32[8,256], index: 1, kind: input, shape index: {}]   ;;  %s332_s2 = inlined_call_operand.hbm [shape: f32[1,8,128], index: 2, kind: output, shape index: {}]  }
   0x1   :  { %8 = vsyncpa [#allocation6], 0 }
   0x2   :  { %9 = vsyncpa [#allocation4], 0  ;;  %s15_s11 = sshll.u32 %s330_s0, 4  ;;  %s270_s12 = smov [#allocation2]   ;;  %s16_s11 = int_to_ptr.hbm [resolvable:$true] %s15_s11 }
   0x3   :  { %s17_s13 = sshll.u32 %s270_s12, 4  ;;  %s26_s16 = sshll.u32 %s331_s1, 4  ;;  %s18_s13 = int_to_ptr.vmem [resolvable:$true] %s17_s13  ;;  %s27_s16 = int_to_ptr.hbm [resolvable:$true] %s26_s16 }
   0x4   :  { %20 = dma.hbm_to_vmem [thread:$0]  %s16_s11, 256, %s18_s13, [#allocation3]  }
   0x5   :  { %s271_s17 = smov [#allocation5]  }
   0x6   :  { %s28_s18 = sshll.u32 %s271_s17, 4  ;;  %s29_s18 = int_to_ptr.vmem [resolvable:$true] %s28_s18 }
   0x7   :  { %31 = dma.hbm_to_vmem [thread:$0]  %s27_s16, 256, %s29_s18, [#allocation6]  }
   0x8   :  { %264 = dma.done.wait [#allocation3], 256  }
   0x9   :  { %265 = vsyncadd [#allocation3], 4294967040 }
   0xa   :  { %266 = dma.done.wait [#allocation6], 256  }
   0xb   :  { %267 = vsyncadd [#allocation6], 4294967040  ;;  %v297_v0 = vld [vmem:[#allocation2 + $0x8] sm:$0xff]  ;;  %s272_s0 = smov 16   ;;  %s273_s19 = smov 127   ;;  %v302_v1 = vld [vmem:[#allocation5 + $0x8] sm:$0xff]  ;;  %v44_v15 = vlaneseq }
   0xc   :  { %119 = vrot.lane.b32.xlu0 %v297_v0, %s272_s0  ;;  %53 = vrot.lane.b32.xlu2 %v297_v0, %s273_s19  ;;  %v307_v2 = vld [vmem:[#allocation5] sm:$0xff]  ;;  %s274_s1 = smov 112   ;;  %v40_v4 = vld [vmem:[#allocation2] sm:$0xff]  ;;  %v114_v12 = vand.u32 2147483647, %v297_v0  ;;  %vm141_vm4 = vcmask 130048  }
   0xd   :  { %v115_v13 = vand.u32 2147483647, %v302_v1  ;;  %v45_v18 = vand.u32 127, %v44_v15  ;;  %vm153_vm5 = vcmask 7168   ;;  %s275_s20 = smov [#allocation7]   ;;  %s173_s24 = sshll.u32 %s332_s2, 4  ;;  %s174_s24 = int_to_ptr.hbm [resolvable:$true] %s173_s24 }
   0xe   :  { %s171_s21 = sshll.u32 %s275_s20, 4  ;;  %s172_s21 = int_to_ptr.vmem [resolvable:$true] %s171_s21 }
   0xf   :  { %v116_v14 = vsub.f32 %v114_v12, %v115_v13  ;;  %v46_v21 = vadd.s32 128, %v45_v18  ;;  %v47_v22 = vand.u32 15, %v45_v18  ;;  %vm55_vm0 = vcmp.lt.s32.totalorder %v45_v18, 127 }
  0x10   :  { %vm88_vm3 = vcmp.lt.s32.totalorder %v45_v18, 112 }
  0x11   :  { %v117_v17 = vand.u32 2147483647, %v116_v14  ;;  %v48_v24 = vand.u32 15, %v46_v21  ;;  %vm49_vm1 = vcmp.eq.s32.totalorder %v47_v22, 15 }
  0x13   :  { %vm50_vm2 = vcmp.eq.s32.totalorder %v48_v24, 15 }
  0x14   :  { %125 = vrot.lane.b32.xlu0 %v302_v1, %s272_s0  ;;  %64 = vrot.lane.b32.xlu2 %v307_v2, %s273_s19 }
  0x1c   :  { %66 = vrot.lane.b32.xlu0 %v302_v1, %s273_s19  ;;  %86 = vrot.lane.b32.xlu2 %v297_v0, %s274_s1 }
  0x24   :  { %91 = vrot.lane.b32.xlu0 %v307_v2, %s274_s1 }
  0x66   :  { %v54_v16 = vpop.permute.xlu2 %53 }
  0x6e   :  { %v65_v23 = vpop.permute.xlu2 %64 }
  0x76   :  { %v87_v37 = vpop.permute.xlu2 %86 }
  0x7e   :  { %v120_v3 = vpop.permute.xlu0 %119 }
  0x7f   :  { %v122_v5 = vsub.f32 %v40_v4, %v120_v3 }
  0x81   :  { %v123_v8 = vand.u32 2147483647, %v122_v5 }
  0x86   :  { %v126_v6 = vpop.permute.xlu0 %125 }
  0x87   :  { %v128_v7 = vsub.f32 %v307_v2, %v126_v6 }
  0x89   :  { %v129_v9 = vand.u32 2147483647, %v128_v7 }
  0x8b   :  { %v130_v10 = vsub.f32 %v123_v8, %v129_v9 }
  0x8d   :  { %v131_v11 = vand.u32 2147483647, %v130_v10 }
  0x8e   :  { %v67_v26 = vpop.permute.xlu0 %66 }
  0x8f   :  { %133 = vrot.lane.b32.xlu1 %v131_v11, %s274_s1  ;;  %v68_v27 = vsel %vm55_vm0, %v65_v23, %v67_v26  ;;  %v69_v30 = vsel %vm55_vm0, %v67_v26, %v65_v23 }
  0x90   :  { %v70_v31 = vsel %vm49_vm1, 0.0, %v68_v27  ;;  %v71_v34 = vsel %vm50_vm2, 0.0, %v69_v30 }
  0x91   :  { %v76_v35 = vsub.f32 %v70_v31, %v307_v2  ;;  %v77_v40 = vsub.f32 %v71_v34, %v302_v1 }
  0x93   :  { %v78_v43 = vand.u32 2147483647, %v76_v35  ;;  %v79_v46 = vand.u32 2147483647, %v77_v40 }
  0x96   :  { %v92_v49 = vpop.permute.xlu0 %91 }
  0x97   :  { %51 = vrot.lane.b32.xlu1 %v40_v4, %s273_s19 }
  0x9f   :  { %84 = vrot.lane.b32.xlu1 %v40_v4, %s274_s1 }
  0xa7   :  { %93 = vrot.lane.b32.xlu1 %v302_v1, %s274_s1 }
 0x101   :  { %v134_v19 = vpop.permute.xlu1 %133 }
 0x102   :  { %v136_v20 = vsub.f32 %v117_v17, %v134_v19 }
 0x104   :  { %138 = vrot.lane.b32.xlu2 %v136_v20, %s272_s0 }
 0x109   :  { %v52_v25 = vpop.permute.xlu1 %51 }
 0x10a   :  { %v56_v28 = vsel %vm55_vm0, %v52_v25, %v54_v16  ;;  %v57_v29 = vsel %vm55_vm0, %v54_v16, %v52_v25 }
 0x10b   :  { %v62_v32 = vsel %vm49_vm1, 0.0, %v56_v28  ;;  %v63_v33 = vsel %vm50_vm2, 0.0, %v57_v29 }
 0x10c   :  { %v72_v38 = vsub.f32 %v62_v32, %v40_v4  ;;  %v73_v39 = vsub.f32 %v63_v33, %v297_v0 }
 0x10e   :  { %v74_v44 = vand.u32 2147483647, %v72_v38  ;;  %v75_v45 = vand.u32 2147483647, %v73_v39 }
 0x110   :  { %v80_v53 = vsub.f32 %v74_v44, %v78_v43  ;;  %v81_v54 = vsub.f32 %v75_v45, %v79_v46 }
 0x111   :  { %v85_v36 = vpop.permute.xlu1 %84 }
 0x112   :  { %v89_v41 = vsel %vm88_vm3, %v85_v36, %v87_v37  ;;  %v90_v42 = vsel %vm88_vm3, %v87_v37, %v85_v36  ;;  %v82_v63 = vand.u32 2147483647, %v80_v53 }
 0x113   :  { %v97_v47 = vsub.f32 %v89_v41, %v40_v4  ;;  %v98_v48 = vsub.f32 %v90_v42, %v297_v0  ;;  %v83_v0 = vand.u32 2147483647, %v81_v54 }
 0x115   :  { %v99_v55 = vand.u32 2147483647, %v97_v47  ;;  %v100_v56 = vand.u32 2147483647, %v98_v48 }
 0x119   :  { %v94_v50 = vpop.permute.xlu1 %93 }
 0x11a   :  { %v95_v51 = vsel %vm88_vm3, %v92_v49, %v94_v50  ;;  %v96_v52 = vsel %vm88_vm3, %v94_v50, %v92_v49 }
 0x11b   :  { %v101_v57 = vsub.f32 %v95_v51, %v307_v2  ;;  %v102_v58 = vsub.f32 %v96_v52, %v302_v1 }
 0x11d   :  { %v103_v59 = vand.u32 2147483647, %v101_v57  ;;  %v104_v60 = vand.u32 2147483647, %v102_v58 }
 0x11f   :  { %v105_v61 = vsub.f32 %v99_v55, %v103_v59  ;;  %v106_v62 = vsub.f32 %v100_v56, %v104_v60 }
 0x121   :  { %v107_v3 = vand.u32 2147483647, %v105_v61  ;;  %v108_v4 = vand.u32 2147483647, %v106_v62 }
 0x123   :  { %v109_v5 = vadd.f32 %v107_v3, %v82_v63  ;;  %v110_v6 = vadd.f32 %v108_v4, %v83_v0 }
 0x125   :  { %v111_v7 = vadd.f32 %v110_v6, %v109_v5 }
 0x127   :  { %112 = vadd.xlane.f32.xlu0 %v111_v7 }
 0x15e   :  { %v139_v8 = vpop.permute.xlu2 %138 }
 0x15f   :  { %v142_v9 = vsel %vm141_vm4, %v139_v8, 0.0 }
 0x160   :  { %143 = vadd.xlane.f32.xlu1 %v142_v9 }
 0x19a   :  { %v113_v10 = vpop.xlane.xlu0 %112 }
 0x1d3   :  { %v144_v2 = vpop.xlane.xlu1 %143 }
 0x1d4   :  { %v145_v1 = vadd.f32 %v144_v2, %v113_v10 }
 0x1d6   :  { %v154_v11 = vsel %vm153_vm5, %v145_v1, 0.0 }
 0x1d7   :  { %155 = vadd.xlane.f32.xlu2 %v154_v11 }
 0x24a   :  { %v156_v12 = vpop.xlane.xlu2 %155 }
 0x24b   :  { %v157_v13 = vrot.slane %v156_v12, 4 }
 0x24d   :  { %v158_v14 = vadd.f32 %v157_v13, %v156_v12 }
 0x24f   :  { %v159_v15 = vrot.slane %v158_v14, 2 }
 0x251   :  { %v160_v16 = vadd.f32 %v159_v15, %v158_v14 }
 0x253   :  { %v161_v17 = vrot.slane %v160_v16, 1 }
 0x255   :  { %v162_v18 = vadd.f32 %v161_v17, %v160_v16 }
 0x257   :  { %184 = vpush %v162_v18 }
 0x288   :  { %s185_s25 = spop %184 }
 0x289   :  { %v164_v19 = vstv %s185_s25 }
 0x28a   :  { %165 = vst [vmem:[#allocation7] sm:$0xff] %v164_v19 }
 0x28b   :  { %176 = dma.vmem_to_hbm [thread:$0]  %s172_s21, 128, %s174_s24, [#allocation4]  }
 0x28c   :  { %268 = dma.done.wait [#allocation4], 128  }
 0x28d   :  { %269 = vsyncadd [#allocation4], 4294967168 }
 0x28e   :  { %181 = vsyncpa [#allocation3], 1 }
 0x28f   :  { %182 = vsyncpa [#allocation6], 1 }
 0x290   :  { %183 = vsyncpa [#allocation4], 1 }

</bundles_post_ra>
